<compile_context>
chip_gen: v5e
topology: v5e:2x2
jax: 0.10.0
libtpu: 0.0.40
codegen_flags: <defaults>
</compile_context>

<pallas_src>
import functools

import jax
import jax.numpy as jnp
from jax.experimental import pallas as pl
from jax.experimental.pallas import tpu as pltpu

_SUBLANES = 8
_TARGET_BLOCK_BYTES = 4 * 1024 * 1024   # ~4 MiB/input block: ~86%-of-roofline plateau
_VMEM_LIMIT_BYTES = 48 * 1024 * 1024


def _tensorcores_per_chip():
    """Best-effort TensorCore count per chip (2 on v7x, 1 on v5e/v6e)."""
    try:
        info = pltpu.get_tpu_info()
        for name in ("num_tensorcores", "tensorcore_count", "num_cores",
                     "core_count", "cores_per_chip"):
            v = getattr(info, name, None)
            if isinstance(v, int) and 1 <= v <= 8:
                return v
    except Exception:
        pass
    try:
        kind = jax.devices()[0].device_kind.lower()
        if "7" in kind:
            return 2
    except Exception:
        pass
    return 1  # conservative default: correct on v5e/v6e, merely serial on v7x


def _bpr_loss_kernel(pos_ref, neg_ref, out_ref, *,
                     block_m, tiles_per_part, m_total, ragged):
    i = pl.program_id(1)                      # reduction step ("arbitrary")

    @pl.when(i == 0)
    def _init():
        out_ref[...] = jnp.zeros_like(out_ref)

    pos = pos_ref[...].astype(jnp.float32)
    neg = neg_ref[...].astype(jnp.float32)
    d = pos - neg
    nd = neg - pos
    # -log(sigmoid(d)) == softplus(-d) == max(-d, 0) + log1p(exp(-|d|)),
    # with min(d, -d) == -|d| (saves the abs/neg chain; VALU-lean for v7x).
    nll = jnp.maximum(nd, 0.0) + jnp.log1p(jnp.exp(jnp.minimum(d, nd)))

    def _accumulate(vals):
        # Sublane-axis partial sum -> (1, N), accumulated into the resident
        # output block (VPU/XLU work hidden under the input DMA).
        out_ref[...] += jnp.sum(vals, axis=0, keepdims=True)[None, :, :]

    if ragged:
        # Only the single ragged row-tile pays for iota + compare + select.
        tile = pl.program_id(0) * tiles_per_part + i
        limit = m_total - tile * block_m       # valid rows in this tile

        @pl.when(limit >= block_m)
        def _full_tile():
            _accumulate(nll)

        @pl.when(limit < block_m)
        def _partial_tile():
            rows = jax.lax.broadcasted_iota(jnp.int32, nll.shape, 0)
            _accumulate(jnp.where(rows < limit, nll, 0.0))
    else:
        _accumulate(nll)


def _as_2d(x):
    if x.ndim == 2:
        return x
    if x.ndim == 0:
        return x.reshape(1, 1)
    if x.ndim == 1:
        return x.reshape(1, x.shape[0])
    # Collapse leading dims; the minor (lane) dim is untouched -> layout-cheap.
    return x.reshape(-1, x.shape[-1])


def bpr_loss(pos_preds, neg_preds, *, block_rows_max=None, num_parts=None):
    """Pallas TPU implementation of BPRLoss.forward. Returns an f32 scalar."""
    assert pos_preds.shape == neg_preds.shape, "pos/neg shapes must match"
    total = int(pos_preds.size)
    assert total > 0

    pos2d = _as_2d(pos_preds)
    neg2d = _as_2d(neg_preds)
    m_total, n = pos2d.shape
    itemsize = jnp.dtype(pos2d.dtype).itemsize

    # Row-tile size: ~4 MiB per input block (auto-scales with dtype width);
    # rows are a multiple of 8 unless one block covers the whole array.
    rows_target = max(_SUBLANES,
                      (_TARGET_BLOCK_BYTES // max(1, n * itemsize))
                      // _SUBLANES * _SUBLANES)
    if block_rows_max is not None:
        rows_target = min(rows_target,
                          max(_SUBLANES, block_rows_max // _SUBLANES * _SUBLANES))
    block_m = m_total if m_total <= rows_target else rows_target
    n_blocks = -(-m_total // block_m)
    # TODO(synk): for extremely wide rows (n * 8 * itemsize >> 4 MiB) the lane
    # dimension should be tiled too; not needed for typical BPR score shapes.

    # Generation-aware split across TensorCores, made exact (no clamped
    # duplicate tile -> no redundant HBM reads, balanced per-core work).
    n_parts = _tensorcores_per_chip() if num_parts is None else int(num_parts)
    n_parts = max(1, min(n_parts, n_blocks))
    if n_parts > 1:
        bm, nb = block_m, n_blocks
        while nb % n_parts != 0 and bm > _SUBLANES:
            bm -= _SUBLANES
            nb = -(-m_total // bm)
        if nb % n_parts == 0:
            block_m, n_blocks = bm, nb
        else:
            n_parts = 1
    tiles_per_part = n_blocks // n_parts
    ragged = (m_total % block_m) != 0

    kernel = functools.partial(
        _bpr_loss_kernel,
        block_m=block_m,
        tiles_per_part=tiles_per_part,
        m_total=m_total,
        ragged=ragged,
    )

    in_map = lambda p, i: (p * tiles_per_part + i, 0)

    partials = pl.pallas_call(
        kernel,
        out_shape=jax.ShapeDtypeStruct((n_parts, 1, n), jnp.float32),
        grid_spec=pltpu.PrefetchScalarGridSpec(
            num_scalar_prefetch=0,
            grid=(n_parts, tiles_per_part),
            in_specs=[
                pl.BlockSpec((block_m, n), in_map),
                pl.BlockSpec((block_m, n), in_map),
            ],
            out_specs=pl.BlockSpec((1, 1, n), lambda p, i: (p, 0, 0)),
        ),
        compiler_params=pltpu.CompilerParams(
            dimension_semantics=("parallel", "arbitrary"),
            vmem_limit_bytes=_VMEM_LIMIT_BYTES,
        ),
    )(pos2d, neg2d)

    # Tiny epilogue: one (n_parts * n)-element reduce + the mean.
    return jnp.sum(partials) / jnp.float32(total)


if __name__ == "__main__":
    key = jax.random.PRNGKey(0)
    k1, k2, k3, k4, k5, k6, k7, k8 = jax.random.split(key, 8)

    def ref_loss(p, n):
        return -jnp.mean(jnp.log(jax.nn.sigmoid(p - n)))

    # 1) Small 2-D batch of scores (single block, M < 8, native last dim 16).
    pos = jax.random.normal(k1, (2, 16), dtype=jnp.float32)
    neg = jax.random.normal(k2, (2, 16), dtype=jnp.float32)
    out = jax.block_until_ready(bpr_loss(pos, neg))
    assert jnp.allclose(out, ref_loss(pos, neg), rtol=1e-5, atol=1e-5), (out, ref_loss(pos, neg))

    # 2) Non-128-multiple native last dim, no wrapper pad / relayout.
    pos = jax.random.normal(k3, (5, 1000), dtype=jnp.float32)
    neg = jax.random.normal(k4, (5, 1000), dtype=jnp.float32)
    out = jax.block_until_ready(bpr_loss(pos, neg))
    assert jnp.allclose(out, ref_loss(pos, neg), rtol=1e-5, atol=1e-5), (out, ref_loss(pos, neg))

    # 3) Multi-tile + ragged last tile + forced 2-part split: exercises the
    #    exact-split logic and the in-kernel guarded row mask on any chip.
    pos = jax.random.normal(k5, (53, 96), dtype=jnp.float32)
    neg = jax.random.normal(k6, (53, 96), dtype=jnp.float32)
    out = jax.block_until_ready(bpr_loss(pos, neg, block_rows_max=16, num_parts=2))
    assert jnp.allclose(out, ref_loss(pos, neg), rtol=1e-5, atol=1e-5), (out, ref_loss(pos, neg))

    # 4) 1-D score vector (common BPR usage).
    pos = jax.random.normal(k7, (37,), dtype=jnp.float32)
    neg = jax.random.normal(k8, (37,), dtype=jnp.float32)
    out = jax.block_until_ready(bpr_loss(pos, neg))
    assert jnp.allclose(out, ref_loss(pos, neg), rtol=1e-5, atol=1e-5), (out, ref_loss(pos, neg))

    print("KERNEL_OK")
</pallas_src>

<mosaic_0001>
module attributes {stable_mosaic.version = 11 : i64} {
  func.func @_bpr_loss_kernel(%arg0: i32, %arg1: i32, %arg2: memref<2x16xf32, #tpu.memory_space<vmem>>, %arg3: memref<2x16xf32, #tpu.memory_space<vmem>>, %arg4: memref<1x1x16xf32, #tpu.memory_space<vmem>>) attributes {dimension_semantics = [#tpu.dimension_semantics<parallel>, #tpu.dimension_semantics<arbitrary>], iteration_bounds = array<i64: 1, 1>, scalar_prefetch = 0 : i64, scratch_operands = 0 : i64, tpu.core_type = #tpu.core_type<tc>, window_params = [{transform_indices = @transform_0, window_bounds = array<i64: 2, 16>}, {transform_indices = @transform_1, window_bounds = array<i64: 2, 16>}, {transform_indices = @transform_2, window_bounds = array<i64: 1, 1, 16>}]} {
    %c0_i32 = arith.constant 0 : i32
    %0 = arith.cmpi eq, %arg1, %c0_i32 : i32
    %1 = arith.extui %0 : i1 to i32
    %c0_i32_0 = arith.constant 0 : i32
    %2 = arith.cmpi ne, %1, %c0_i32_0 : i32
    scf.if %2 {
      %cst_11 = arith.constant 0.000000e+00 : f32
      %19 = vector.broadcast %cst_11 : f32 to vector<1x1x16xf32>
      %c0_12 = arith.constant 0 : index
      %c0_13 = arith.constant 0 : index
      %c0_14 = arith.constant 0 : index
      %20 = vector.load %arg4[%c0_12, %c0_13, %c0_14] : memref<1x1x16xf32, #tpu.memory_space<vmem>>, vector<1x1x16xf32>
      tpu.vector_store %arg4[%c0_12, %c0_13, %c0_14], %19 {strides = array<i32>} : memref<1x1x16xf32, #tpu.memory_space<vmem>>, vector<1x1x16xf32>,
    } else {
    }
    %c0 = arith.constant 0 : index
    %c0_1 = arith.constant 0 : index
    %3 = vector.load %arg2[%c0, %c0_1] : memref<2x16xf32, #tpu.memory_space<vmem>>, vector<2x16xf32>
    %c0_2 = arith.constant 0 : index
    %c0_3 = arith.constant 0 : index
    %4 = vector.load %arg3[%c0_2, %c0_3] : memref<2x16xf32, #tpu.memory_space<vmem>>, vector<2x16xf32>
    %5 = arith.subf %3, %4 : vector<2x16xf32>
    %6 = arith.subf %4, %3 : vector<2x16xf32>
    %cst = arith.constant 0.000000e+00 : f32
    %7 = vector.broadcast %cst : f32 to vector<2x16xf32>
    %8 = arith.maximumf %6, %7 : vector<2x16xf32>
    %9 = arith.minimumf %5, %6 : vector<2x16xf32>
    %10 = math.exp %9 : vector<2x16xf32>
    %11 = math.log1p %10 : vector<2x16xf32>
    %12 = arith.addf %8, %11 : vector<2x16xf32>
    %c0_4 = arith.constant 0 : index
    %c0_5 = arith.constant 0 : index
    %c0_6 = arith.constant 0 : index
    %13 = vector.load %arg4[%c0_4, %c0_5, %c0_6] : memref<1x1x16xf32, #tpu.memory_space<vmem>>, vector<1x1x16xf32>
    %cst_7 = arith.constant dense<0.000000e+00> : vector<16xf32>
    %14 = vector.multi_reduction <add>, %12, %cst_7 [0] : vector<2x16xf32> to vector<16xf32>
    %15 = vector.shape_cast %14 : vector<16xf32> to vector<1x16xf32>
    %16 = vector.shape_cast %15 : vector<1x16xf32> to vector<1x1x16xf32>
    %17 = arith.addf %13, %16 : vector<1x1x16xf32>
    %c0_8 = arith.constant 0 : index
    %c0_9 = arith.constant 0 : index
    %c0_10 = arith.constant 0 : index
    %18 = vector.load %arg4[%c0_8, %c0_9, %c0_10] : memref<1x1x16xf32, #tpu.memory_space<vmem>>, vector<1x1x16xf32>
    tpu.vector_store %arg4[%c0_8, %c0_9, %c0_10], %17 {strides = array<i32>} : memref<1x1x16xf32, #tpu.memory_space<vmem>>, vector<1x1x16xf32>,
    return
  }
  func.func @transform_0(%arg0: i32, %arg1: i32) -> (i32, i32) {
    %c1_i32 = arith.constant 1 : i32
    %0 = arith.muli %arg0, %c1_i32 : i32
    %1 = arith.addi %0, %arg1 : i32
    %c0_i32 = arith.constant 0 : i32
    %c0_i32_0 = arith.constant 0 : i32
    return %1, %c0_i32 : i32, i32
  }
  func.func @transform_1(%arg0: i32, %arg1: i32) -> (i32, i32) {
    %c1_i32 = arith.constant 1 : i32
    %0 = arith.muli %arg0, %c1_i32 : i32
    %1 = arith.addi %0, %arg1 : i32
    %c0_i32 = arith.constant 0 : i32
    %c0_i32_0 = arith.constant 0 : i32
    return %1, %c0_i32 : i32, i32
  }
  func.func @transform_2(%arg0: i32, %arg1: i32) -> (i32, i32, i32) {
    %c0_i32 = arith.constant 0 : i32
    %c0_i32_0 = arith.constant 0 : i32
    %c0_i32_1 = arith.constant 0 : i32
    return %arg0, %c0_i32, %c0_i32_0 : i32, i32, i32
  }
}

</mosaic_0001>

<bundles_post_ra>
// kernel: tpu_custom_call.1
= control target key start
LH: loop header
LB: loop body
LE: loop exit
PB: predicated region body
PF: predicated region fallthrough
CT: control target
= control target key end

     0   :  { %7 = vsyncpa [#allocation3], 0  ;;  %s218_s0 = inlined_call_operand.hbm [shape: f32[2,16], index: 0, kind: input, shape index: {}]   ;;  %s219_s1 = inlined_call_operand.hbm [shape: f32[2,16], index: 1, kind: input, shape index: {}]   ;;  %s220_s2 = inlined_call_operand.hbm [shape: f32[1,1,16], index: 2, kind: output, shape index: {}]  }
   0x1   :  { %8 = vsyncpa [#allocation6], 0 }
   0x2   :  { %9 = vsyncpa [#allocation4], 0  ;;  %s18_s11 = sshll.u32 %s218_s0, 4  ;;  %s188_s12 = smov [#allocation2]   ;;  %s19_s11 = int_to_ptr.hbm [resolvable:$true] %s18_s11 }
   0x3   :  { %s20_s13 = sshll.u32 %s188_s12, 4  ;;  %s32_s16 = sshll.u32 %s219_s1, 4  ;;  %s21_s13 = int_to_ptr.vmem [resolvable:$true] %s20_s13  ;;  %s33_s16 = int_to_ptr.hbm [resolvable:$true] %s32_s16 }
   0x4   :  { %23 = dma.hbm_to_vmem [thread:$0]  %s19_s11, 32, %s21_s13, [#allocation3]  }
   0x5   :  { %s189_s17 = smov [#allocation5]  }
   0x6   :  { %s34_s18 = sshll.u32 %s189_s17, 4  ;;  %s35_s18 = int_to_ptr.vmem [resolvable:$true] %s34_s18 }
   0x7   :  { %37 = dma.hbm_to_vmem [thread:$0]  %s33_s16, 32, %s35_s18, [#allocation6]  }
   0x8   :  { %182 = dma.done.wait [#allocation3], 32  }
   0x9   :  { %183 = vsyncadd [#allocation3], 4294967264 }
   0xa   :  { %184 = dma.done.wait [#allocation6], 32  }
   0xb   :  { %185 = vsyncadd [#allocation6], 4294967264  ;;  %vm52_vm0 = vcmask 122880   ;;  %v190_v0 = vmov 0.0   ;;  %v54_v1 = vld [vmem:[#allocation2] sm:$0x3] }
   0xc   :  { %53 = vst.msk [vmem:[#allocation7] sm:$0x1] %vm52_vm0, %v190_v0  ;;  %v55_v2 = vld [vmem:[#allocation5] sm:$0x3]  ;;  %vm73_vm2 = vcmask 123904   ;;  %s191_s0 = smov [#allocation7]  }
   0xd   :  { %v56_v3 = vsub.f32 %v54_v1, %v55_v2  ;;  %v57_v4 = vsub.f32 %v55_v2, %v54_v1  ;;  %s89_s1 = sshll.u32 %s191_s0, 4  ;;  %s91_s21 = sshll.u32 %s220_s2, 4  ;;  %s90_s1 = int_to_ptr.vmem [resolvable:$true] %s89_s1  ;;  %s92_s21 = int_to_ptr.hbm [resolvable:$true] %s91_s21 }
   0xf   :  { %v59_v5 = vmin.f32 %v56_v3, %v57_v4  ;;  %v58_v14 = vmax.f32 %v57_v4, 0.0 }
  0x11   :  { %v60_v6 = vmul.f32 1.442695, %v59_v5 }
  0x13   :  { %106 = vpow2.f32 %v60_v6  ;;  %v72_v24 = vld [vmem:[#allocation7] sm:$0x1] }
  0x19   :  { %v107_v7 = vpop.eup %106 }
  0x1a   :  { %v62_v8 = vadd.f32 1.0, %v107_v7  ;;  %v65_v9 = vmul.f32 -0.5, %v107_v7  ;;  %v68_v11 = vand.u32 2147483647, %v107_v7 }
  0x1c   :  { %108 = vlog2.f32 %v62_v8  ;;  %v66_v10 = vadd.f32 1.0, %v65_v9  ;;  %vm69_vm1 = vcmp.lt.f32.partialorder %v68_v11, 0.0004427343 }
  0x1e   :  { %v67_v12 = vmul.f32 %v107_v7, %v66_v10 }
  0x22   :  { %v109_v13 = vpop.eup %108 }
  0x23   :  { %v64_v15 = vmul.f32 0.6931472, %v109_v13 }
  0x25   :  { %v70_v16 = vsel %vm69_vm1, %v67_v12, %v64_v15 }
  0x26   :  { %v71_v17 = vadd.f32 %v70_v16, %v58_v14 }
  0x28   :  { %v74_v18 = vsel %vm73_vm2, %v71_v17, 0.0 }
  0x29   :  { %v75_v19 = vrot.slane %v74_v18, 4 }
  0x2b   :  { %v76_v20 = vadd.f32 %v75_v19, %v74_v18 }
  0x2d   :  { %v77_v21 = vrot.slane %v76_v20, 2 }
  0x2f   :  { %v78_v22 = vadd.f32 %v77_v21, %v76_v20 }
  0x31   :  { %v79_v23 = vrot.slane %v78_v22, 1 }
  0x33   :  { %v80_v25 = vadd.f32 %v79_v23, %v78_v22 }
  0x35   :  { %v81_v26 = vadd.f32 %v80_v25, %v72_v24 }
  0x37   :  { %83 = vst.msk [vmem:[#allocation7] sm:$0x1] %vm52_vm0, %v81_v26 }
  0x38   :  { %94 = dma.vmem_to_hbm [thread:$0]  %s90_s1, 16, %s92_s21, [#allocation4]  }
  0x39   :  { %186 = dma.done.wait [#allocation4], 16  }
  0x3a   :  { %187 = vsyncadd [#allocation4], 4294967280 }
  0x3b   :  { %99 = vsyncpa [#allocation3], 1 }
  0x3c   :  { %100 = vsyncpa [#allocation6], 1 }
  0x3d   :  { %101 = vsyncpa [#allocation4], 1 }

</bundles_post_ra>
